<compile_context>
chip_gen: v5e
topology: v5e:2x2
jax: 0.10.0
libtpu: 0.0.40
codegen_flags: <defaults>
</compile_context>

<pallas_src>
import jax
import jax.numpy as jnp
from jax.experimental import pallas as pl
from jax.experimental.pallas import tpu as pltpu


def _lsae_kernel(x_ref, w_enc_ref, b_enc_ref, w_head_ref, b_head_ref,
                 out_ref, acc_ref):
    """Grid = (batch_tiles, texture_tiles).

    Per step: feats_tile = x @ W_enc_tile + b_enc_tile        (MXU, f32 acc)
              acc       += feats_tile * w_head_tile           (VPU)
    Last texture step: logit = sum(acc, lanes) + b_head ; out = sigmoid(logit)
    """
    t = pl.program_id(1)

    @pl.when(t == 0)
    def _():
        acc_ref[...] = jnp.zeros_like(acc_ref)

    # Encoder tile: [TB, D_IN](bf16) @ [D_IN, TT](bf16) -> [TB, TT] f32.
    feats = jnp.dot(x_ref[...], w_enc_ref[...],
                    preferred_element_type=jnp.float32)
    feats = feats + b_enc_ref[...]                       # broadcast [1, TT]

    # Head partial product on the VPU (avoid an N=1 MXU pass); the cross-lane
    # reduction is deferred to the final texture step.
    acc_ref[...] += feats * w_head_ref[...]              # [TB, TT]

    @pl.when(t == pl.num_programs(1) - 1)
    def _():
        logit = jnp.sum(acc_ref[...], axis=-1, keepdims=True)  # [TB, 1]
        logit = logit + b_head_ref[0, 0]
        # Lane-dense store: broadcast across the 128-lane axis; glue keeps col 0.
        out_ref[...] = jnp.broadcast_to(jax.nn.sigmoid(logit), out_ref.shape)


def lsae_classifier_fullim(x_nchw, w_enc, b_enc, w_head, b_head,
                           *, tb=8, tt=256):
    """x_nchw: [B, C, H, W] float32. Returns [B, 1] float32 probabilities."""
    B = x_nchw.shape[0]
    d_in = x_nchw.shape[1] * x_nchw.shape[2] * x_nchw.shape[3]
    T = w_enc.shape[1]

    # Glue: flatten, cast the mem-bound operands to bf16 (f32 MXU accumulation
    # inside the kernel preserves accuracy for the frozen classifier).
    x_bf16 = x_nchw.reshape(B, d_in).astype(jnp.bfloat16)
    w_enc_bf16 = w_enc.astype(jnp.bfloat16)

    # Pad batch up to a sublane/batch-tile multiple.
    b_pad = ((B + tb - 1) // tb) * tb
    if b_pad != B:
        x_bf16 = jnp.pad(x_bf16, ((0, b_pad - B), (0, 0)))

    tt = min(tt, T)
    assert T % tt == 0 and tt % 128 == 0, "texture tile must be lane/MXU aligned"
    assert d_in % 128 == 0, "flattened image dim must be lane aligned"

    b_enc_row = b_enc.reshape(1, T).astype(jnp.float32)
    w_head_row = w_head.reshape(1, T).astype(jnp.float32)
    b_head_s = b_head.reshape(1, 1).astype(jnp.float32)

    grid = (b_pad // tb, T // tt)

    out = pl.pallas_call(
        _lsae_kernel,
        out_shape=jax.ShapeDtypeStruct((b_pad, 128), jnp.float32),
        grid_spec=pltpu.PrefetchScalarGridSpec(
            num_scalar_prefetch=0,
            grid=grid,
            in_specs=[
                pl.BlockSpec((tb, d_in), lambda b, t: (b, 0)),      # x   (bf16)
                pl.BlockSpec((d_in, tt), lambda b, t: (0, t)),      # W_enc (bf16)
                pl.BlockSpec((1, tt), lambda b, t: (0, t)),         # b_enc
                pl.BlockSpec((1, tt), lambda b, t: (0, t)),         # w_head row
                pl.BlockSpec(memory_space=pltpu.MemorySpace.SMEM),  # b_head scalar
            ],
            out_specs=pl.BlockSpec((tb, 128), lambda b, t: (b, 0)),
            scratch_shapes=[pltpu.VMEM((tb, tt), jnp.float32)],
        ),
        compiler_params=pltpu.CompilerParams(
            dimension_semantics=("parallel", "arbitrary")),
    )(x_bf16, w_enc_bf16, b_enc_row, w_head_row, b_head_s)

    return out[:B, 0:1]


if __name__ == "__main__":
    # Small shapes consistent with the module: thermal image batch, texture_dims=1024.
    B, C, H, W = 2, 4, 16, 16
    TEXTURE_DIMS = 1024
    D_IN = C * H * W

    key = jax.random.PRNGKey(0)
    k_x, k_we, k_be, k_wh, k_bh = jax.random.split(key, 5)

    x = jax.random.normal(k_x, (B, C, H, W), dtype=jnp.float32)

    # Frozen encoder stand-in parameters.
    w_enc = jax.random.normal(k_we, (D_IN, TEXTURE_DIMS), dtype=jnp.float32) / jnp.sqrt(D_IN)
    b_enc = jax.random.normal(k_be, (1, TEXTURE_DIMS), dtype=jnp.float32) * 0.01

    # LinearClassificationHead: nn.Linear(texture_dims, 1) (PyTorch-style uniform init scale).
    bound = 1.0 / jnp.sqrt(TEXTURE_DIMS)
    w_head = jax.random.uniform(k_wh, (TEXTURE_DIMS, 1), dtype=jnp.float32,
                                minval=-bound, maxval=bound)
    b_head = jax.random.uniform(k_bh, (1, 1), dtype=jnp.float32,
                                minval=-bound, maxval=bound)

    out = lsae_classifier_fullim(x, w_enc, b_enc, w_head, b_head)
    out = jax.block_until_ready(out)

    # Pure-JAX reference (same bf16-rounded inputs, f32 math) for the check.
    x_q = x.reshape(B, D_IN).astype(jnp.bfloat16).astype(jnp.float32)
    w_q = w_enc.astype(jnp.bfloat16).astype(jnp.float32)
    feats_ref = jnp.dot(x_q, w_q, precision=jax.lax.Precision.HIGHEST) + b_enc
    ref = jax.nn.sigmoid(
        jnp.dot(feats_ref, w_head, precision=jax.lax.Precision.HIGHEST) + b_head)

    assert out.shape == (B, 1)
    assert jnp.allclose(out, ref, atol=2e-4, rtol=1e-3), (out, ref)

    print("KERNEL_OK")
</pallas_src>

<mosaic_0001>
module attributes {stable_mosaic.version = 11 : i64} {
  func.func @_lsae_kernel(%arg0: i32, %arg1: i32, %arg2: memref<8x1024xbf16, #tpu.memory_space<vmem>>, %arg3: memref<1024x256xbf16, #tpu.memory_space<vmem>>, %arg4: memref<1x256xf32, #tpu.memory_space<vmem>>, %arg5: memref<1x256xf32, #tpu.memory_space<vmem>>, %arg6: memref<1x1xf32, #tpu.memory_space<smem>>, %arg7: memref<8x128xf32, #tpu.memory_space<vmem>>, %arg8: memref<8x256xf32, #tpu.memory_space<vmem>>) attributes {dimension_semantics = [#tpu.dimension_semantics<parallel>, #tpu.dimension_semantics<arbitrary>], iteration_bounds = array<i64: 1, 4>, scalar_prefetch = 0 : i64, scratch_operands = 1 : i64, tpu.core_type = #tpu.core_type<tc>, window_params = [{transform_indices = @transform_0, window_bounds = array<i64: 8, 1024>}, {transform_indices = @transform_1, window_bounds = array<i64: 1024, 256>}, {transform_indices = @transform_2, window_bounds = array<i64: 1, 256>}, {transform_indices = @transform_3, window_bounds = array<i64: 1, 256>}, {transform_indices = @transform_4, window_bounds = array<i64: 1, 1>}, {transform_indices = @transform_5, window_bounds = array<i64: 8, 128>}]} {
    %c0_i32 = arith.constant 0 : i32
    %0 = arith.cmpi eq, %arg1, %c0_i32 : i32
    %1 = arith.extui %0 : i1 to i32
    %c0_i32_0 = arith.constant 0 : i32
    %2 = arith.cmpi ne, %1, %c0_i32_0 : i32
    scf.if %2 {
      %cst_13 = arith.constant 0.000000e+00 : f32
      %18 = vector.broadcast %cst_13 : f32 to vector<8x256xf32>
      %c0_14 = arith.constant 0 : index
      %c0_15 = arith.constant 0 : index
      %19 = vector.load %arg8[%c0_14, %c0_15] : memref<8x256xf32, #tpu.memory_space<vmem>>, vector<8x256xf32>
      tpu.vector_store %arg8[%c0_14, %c0_15], %18 {strides = array<i32>} : memref<8x256xf32, #tpu.memory_space<vmem>>, vector<8x256xf32>,
    } else {
    }
    %c0 = arith.constant 0 : index
    %c0_1 = arith.constant 0 : index
    %3 = vector.load %arg2[%c0, %c0_1] : memref<8x1024xbf16, #tpu.memory_space<vmem>>, vector<8x1024xbf16>
    %c0_2 = arith.constant 0 : index
    %c0_3 = arith.constant 0 : index
    %4 = vector.load %arg3[%c0_2, %c0_3] : memref<1024x256xbf16, #tpu.memory_space<vmem>>, vector<1024x256xbf16>
    %cst = arith.constant dense<0.000000e+00> : vector<8x256xf32>
    %5 = tpu.matmul %3, %4, %cst {dimension_numbers = #tpu.dot_dimension_numbers<[1], [0], [0], [1], [0, 0, 1, 1], [], []>} : vector<8x1024xbf16>, vector<1024x256xbf16>, vector<8x256xf32> -> vector<8x256xf32>
    %c0_4 = arith.constant 0 : index
    %c0_5 = arith.constant 0 : index
    %6 = vector.load %arg4[%c0_4, %c0_5] : memref<1x256xf32, #tpu.memory_space<vmem>>, vector<1x256xf32>
    %7 = vector.broadcast %6 : vector<1x256xf32> to vector<8x256xf32>
    %8 = arith.addf %5, %7 : vector<8x256xf32>
    %c0_6 = arith.constant 0 : index
    %c0_7 = arith.constant 0 : index
    %9 = vector.load %arg8[%c0_6, %c0_7] : memref<8x256xf32, #tpu.memory_space<vmem>>, vector<8x256xf32>
    %c0_8 = arith.constant 0 : index
    %c0_9 = arith.constant 0 : index
    %10 = vector.load %arg5[%c0_8, %c0_9] : memref<1x256xf32, #tpu.memory_space<vmem>>, vector<1x256xf32>
    %11 = vector.broadcast %10 : vector<1x256xf32> to vector<8x256xf32>
    %12 = arith.mulf %8, %11 : vector<8x256xf32>
    %13 = arith.addf %9, %12 : vector<8x256xf32>
    %c0_10 = arith.constant 0 : index
    %c0_11 = arith.constant 0 : index
    %14 = vector.load %arg8[%c0_10, %c0_11] : memref<8x256xf32, #tpu.memory_space<vmem>>, vector<8x256xf32>
    tpu.vector_store %arg8[%c0_10, %c0_11], %13 {strides = array<i32>} : memref<8x256xf32, #tpu.memory_space<vmem>>, vector<8x256xf32>,
    %c3_i32 = arith.constant 3 : i32
    %15 = arith.cmpi eq, %arg1, %c3_i32 : i32
    %16 = arith.extui %15 : i1 to i32
    %c0_i32_12 = arith.constant 0 : i32
    %17 = arith.cmpi ne, %16, %c0_i32_12 : i32
    scf.if %17 {
      %c0_13 = arith.constant 0 : index
      %c0_14 = arith.constant 0 : index
      %18 = vector.load %arg8[%c0_13, %c0_14] : memref<8x256xf32, #tpu.memory_space<vmem>>, vector<8x256xf32>
      %cst_15 = arith.constant dense<0.000000e+00> : vector<8xf32>
      %19 = vector.multi_reduction <add>, %18, %cst_15 [1] : vector<8x256xf32> to vector<8xf32>
      %20 = vector.shape_cast %19 : vector<8xf32> to vector<8x1xf32>
      %c0_16 = arith.constant 0 : index
      %c0_17 = arith.constant 0 : index
      %21 = memref.load %arg6[%c0_16, %c0_17] : memref<1x1xf32, #tpu.memory_space<smem>>
      %22 = vector.broadcast %21 : f32 to vector<8x1xf32>
      %23 = arith.addf %20, %22 : vector<8x1xf32>
      %24 = arith.negf %23 : vector<8x1xf32>
      %25 = math.exp %24 : vector<8x1xf32>
      %cst_18 = arith.constant 1.000000e+00 : f32
      %26 = vector.broadcast %cst_18 : f32 to vector<8x1xf32>
      %27 = arith.addf %26, %25 : vector<8x1xf32>
      %28 = arith.divf %26, %27 : vector<8x1xf32>
      %29 = vector.shape_cast %28 : vector<8x1xf32> to vector<8x1xf32>
      %30 = vector.broadcast %29 : vector<8x1xf32> to vector<8x128xf32>
      %c0_19 = arith.constant 0 : index
      %c0_20 = arith.constant 0 : index
      %31 = vector.load %arg7[%c0_19, %c0_20] : memref<8x128xf32, #tpu.memory_space<vmem>>, vector<8x128xf32>
      tpu.vector_store %arg7[%c0_19, %c0_20], %30 {strides = array<i32>} : memref<8x128xf32, #tpu.memory_space<vmem>>, vector<8x128xf32>,
    } else {
    }
    return
  }
  func.func @transform_0(%arg0: i32, %arg1: i32) -> (i32, i32) {
    %c0_i32 = arith.constant 0 : i32
    %c0_i32_0 = arith.constant 0 : i32
    return %arg0, %c0_i32 : i32, i32
  }
  func.func @transform_1(%arg0: i32, %arg1: i32) -> (i32, i32) {
    %c0_i32 = arith.constant 0 : i32
    %c0_i32_0 = arith.constant 0 : i32
    return %c0_i32, %arg1 : i32, i32
  }
  func.func @transform_2(%arg0: i32, %arg1: i32) -> (i32, i32) {
    %c0_i32 = arith.constant 0 : i32
    %c0_i32_0 = arith.constant 0 : i32
    return %c0_i32, %arg1 : i32, i32
  }
  func.func @transform_3(%arg0: i32, %arg1: i32) -> (i32, i32) {
    %c0_i32 = arith.constant 0 : i32
    %c0_i32_0 = arith.constant 0 : i32
    return %c0_i32, %arg1 : i32, i32
  }
  func.func @transform_4(%arg0: i32, %arg1: i32) -> (i32, i32) {
    %c0_i32 = arith.constant 0 : i32
    %c0_i32_0 = arith.constant 0 : i32
    %c0_i32_1 = arith.constant 0 : i32
    return %c0_i32, %c0_i32_0 : i32, i32
  }
  func.func @transform_5(%arg0: i32, %arg1: i32) -> (i32, i32) {
    %c0_i32 = arith.constant 0 : i32
    %c0_i32_0 = arith.constant 0 : i32
    return %arg0, %c0_i32 : i32, i32
  }
}

</mosaic_0001>

<bundles_post_ra>
// kernel: tpu_custom_call.1
= control target key start
LH: loop header
LB: loop body
LE: loop exit
PB: predicated region body
PF: predicated region fallthrough
CT: control target
= control target key end

     0   :  { %s2997_s0 = inlined_call_operand.hbm [shape: bf16[8,1024], index: 0, kind: input, shape index: {}]   ;;  %s2998_s1 = inlined_call_operand.hbm [shape: bf16[1024,1024], index: 1, kind: input, shape index: {}]   ;;  %s2999_s2 = inlined_call_operand.hbm [shape: f32[1,1024], index: 2, kind: input, shape index: {}]   ;;  %s3000_s3 = inlined_call_operand.hbm [shape: f32[1,1024], index: 3, kind: input, shape index: {}]   ;;  %s3001_s4 = inlined_call_operand.<no memory space> [shape: f32[1,1], index: 4, kind: input, shape index: {}]   ;;  %s3002_s5 = inlined_call_operand.hbm [shape: f32[8,128], index: 5, kind: output, shape index: {}]  }
   0x1   :  { %3004 = sst [smem:[#allocation18_spill]] %s2997_s0 }
   0x2   :  { %3005 = sst [smem:[#allocation19_spill]] %s2998_s1 }
   0x3   :  { %10 = sst [smem:[#allocation3]] %s3001_s4 }
   0x4   :  { %11 = vsyncpa [#allocation5], 0 }
   0x5   :  { %12 = vsyncpa [#allocation8], 0 }
   0x6   :  { %14 = vsyncpa [#allocation8 + $0x1], 0 }
   0x7   :  { %15 = vsyncpa [#allocation11], 0 }
   0x8   :  { %17 = vsyncpa [#allocation11 + $0x1], 0 }
   0x9   :  { %18 = vsyncpa [#allocation6], 0  ;;  %s2553_s20 = smov 0   ;;  %s2555_s21 = smov 0  }
   0xa   :  { %s2557_s22 = smov 0   ;;  %s2559_s23 = smov 0  }
   0xb   :  { %s2561_s24 = smov 0   ;;  %s2563_s25 = smov 0  }
   0xc LB: > { %s33_s4 = sadd.s32 1, %s2508_s24  ;;  %s69_s26 = sadd.s32 1, %s2500_s22  ;;  %s2512_s25 = sphi %s2563_s25, %s24_s25   ;;  %s2508_s24 = sphi %s2561_s24, %s3018_s24   ;;  %s2504_s23 = sphi %s2559_s23, %s3017_s23   ;;  %s2500_s22 = sphi %s2557_s22, %s3016_s22   ;;  %s2496_s21 = sphi %s2555_s21, %s3015_s21   ;;  %s2492_s20 = sphi %s2553_s20, %s3014_s20  }
   0xd   : > { %p34_p0 = scmp.ge.s32.totalorder %s33_s4, 4  ;;  %p76_p1 = scmp.ne.s32.totalorder %s2500_s22, %s2496_s21 }
   0xe   : > { %p77_p2 = scmp.eq.s32.totalorder %s2512_s25, 0  ;;  %p2240_p4 = scmp.lt.s32.totalorder %s2512_s25, 4 }
   0xf   : > { %s3020_s4 = smov (%p34_p0, %s33_s4), 0  ;;  %s223_s29 = sand.u32 1, %s2512_s25  }
  0x10   : > { %3006 = sst [smem:[#allocation17_spill]] %s3020_s4  ;;  %p2590_p3 = por %p77_p2, %p76_p1 }
  0x11   : > { %s66_s28 = ssub.s32 %s2508_s24, %s3020_s4  ;;  %s2599_s30 = sand.u32 1, %s2500_s22  }
  0x12   : > { %p67_p5 = scmp.eq.s32.totalorder %s66_s28, 0  ;;  %s2082_s6 = sshll.u32 %s2508_s24, 3 }
  0x13   : > { %s1551_s8 = sshll.u32 %s2599_s30, 10  ;;  %s3008_s1 = sld [smem:[#allocation19_spill]] }
  0x14   : > { %s2603_s7 = scalar_select %p67_p5, %s2500_s22, %s69_s26  }
  0x15   : > { %s227_s13 = scalar_lea.vmem [#allocation7], %s1551_s8  ;;  %p2613_p6 = pnand %p2240_p4, %p2590_p3 }
  0x16   : > { %s235_s14 = sshll.u32 %s227_s13, 4  ;;  %s2617_s16 = scalar_lea.sflag [#allocation8], %s223_s29  ;;  %s236_s14 = int_to_ptr.vmem [resolvable:$true] %s235_s14 }
  0x17   : > { %s2514_s17 = smov 512   ;;  %s2515_s18 = smov 128  }
  0x18   : > { %s2516_s19 = smov 8   ;;  %s2623_s26 = sadd.s32 4294967295, %s2512_s25  }
  0x19   : > { %s232_s11 = scalar_lea.hbm %s3008_s1, %s2082_s6  ;;  %p82_p7 = scmp.ne.s32.totalorder %s2496_s21, %s2492_s20 }
  0x1a   : > { %s233_s12 = sshll.u32 %s232_s11, 4  ;;  %p83_p8 = scmp.eq.s32.totalorder %s2623_s26, 0  ;;  %s234_s12 = int_to_ptr.hbm [resolvable:$true] %s233_s12 }
  0x1b   : > { %2232 = dma.hbm_to_vmem [thread:$0]  (!%p2613_p6), %s234_s12, 16384, %s236_s14, %s2617_s16, %s2514_s17, %s2515_s18, %s2516_s19  }
  0x1c   : > { %p1548_p9 = scmp.ge.s32.totalorder %s2512_s25, 1  ;;  %p192_p10 = scmp.lt.s32.totalorder %s2512_s25, 5 }
  0x1d   : > { %p2632_p11 = por %p83_p8, %p82_p7  ;;  %s3011_s0 = sld [smem:[#allocation18_spill]] }
  0x1e   : > { %p2639_p12 = pnand %p1548_p9, %p192_p10  ;;  %s1554_s20 = sshll.u32 %s2599_s30, 1 }
  0x1f   : > { %s2517_s9 = smov [#allocation4]   ;;  %s1555_s11 = sshll.u32 %s2508_s24, 1 }
  0x20   : > { %p2225_p13 = pneg %p2639_p12  ;;  %s209_s10 = sshll.u32 %s2517_s9, 4  ;;  %s210_s10 = int_to_ptr.vmem [resolvable:$true] %s209_s10 }
  0x21   : > { %s253_s14 = scalar_lea.hbm %s2999_s2, %s1555_s11  ;;  %s249_s17 = scalar_lea.vmem [#allocation9], %s1554_s20 }
  0x22   : > { %p2226_p0 = pnand %p2225_p13, %p83_p8  ;;  %s257_s18 = sshll.u32 %s249_s17, 4  ;;  %s258_s18 = int_to_ptr.vmem [resolvable:$true] %s257_s18 }
  0x23   : > { %s207_s6 = sshll.u32 %s3011_s0, 4  ;;  %s255_s19 = sshll.u32 %s253_s14, 4  ;;  %s208_s6 = int_to_ptr.hbm [resolvable:$true] %s207_s6  ;;  %s256_s19 = int_to_ptr.hbm [resolvable:$true] %s255_s19 }
  0x24   : > { %2228 = dma.hbm_to_vmem [thread:$0]  (!%p2226_p0), %s208_s6, 512, %s210_s10, [#allocation5]  }
  0x25   : > { %2235 = dma.hbm_to_vmem [thread:$0]  (!%p2613_p6), %s256_s19, 32, %s258_s18, %s2617_s16  }
  0x26   : > { %s272_s9 = scalar_lea.hbm %s3000_s3, %s1555_s11  ;;  %s268_s0 = scalar_lea.vmem [#allocation10], %s1554_s20 }
  0x27   : > { %s276_s1 = sshll.u32 %s268_s0, 4  ;;  %s274_s4 = sshll.u32 %s272_s9, 4  ;;  %s277_s1 = int_to_ptr.vmem [resolvable:$true] %s276_s1  ;;  %s275_s4 = int_to_ptr.hbm [resolvable:$true] %s274_s4 }
  0x28   : > { %s265_s12 = scalar_lea.sflag [#allocation11], %s2599_s30  ;;  %285 = sbr.rel (%p2639_p12) target bundleno = 498 (0x1f2), region = 40 }
  0x29   : > { %2238 = dma.hbm_to_vmem [thread:$0]  (!%p2613_p6), %s275_s4, 32, %s277_s1, %s265_s12  }
  0x2d   : > { %2475 = dma.done.wait (%p83_p8), [#allocation5], 512  }
  0x2e   : > { %2477 = vsyncadd (%p83_p8), [#allocation5], 4294966784  ;;  %s292_s16 = sand.u32 1, %s2623_s26   ;;  %s294_s0 = sand.u32 1, %s2496_s21  }
  0x2f   : > { %s1560_s6 = sshll.u32 %s294_s0, 10  ;;  %s293_s20 = scalar_lea.sflag [#allocation8], %s292_s16 }
  0x30   : > { %s2669_s10 = scalar_lea.vmem [#allocation7], %s1560_s6 }
  0x31   : > { %2479 = dma.done.wait (%p2632_p11), %s293_s20, 16416  }
  0x32   : > { %2481 = vsyncadd (%p2632_p11), %s293_s20, 4294950880  ;;  %s1561_s1 = sshll.u32 %s294_s0, 1  ;;  %s313_s30 = scalar_lea.sflag [#allocation11], %s294_s0 }
  0x33   : > { %s2675_s4 = scalar_lea.vmem [#allocation9], %s1561_s1  ;;  %s2677_s15 = scalar_lea.vmem [#allocation10], %s1561_s1 }
  0x34   : > { %2483 = dma.done.wait (%p2632_p11), %s313_s30, 32  }
  0x35   : > { %2485 = vsyncadd (%p2632_p11), %s313_s30, 4294967264  ;;  %p1563_p1 = scmp.ne.s32.totalorder %s2504_s23, 0 }
  0x37   : > { %355 = sbr.rel (%p1563_p1) target bundleno = 63 (0x3f), region = 60 }
  0x3c   : > { %v2518_v0 = vmov 0.0  }
  0x3d   : > { %356 = vst [vmem:[#allocation2] sm:$0xff] %v2518_v0 }
  0x3e   : > { %357 = vst [vmem:[#allocation2 + $0x8] sm:$0xff] %v2518_v0 }
  0x3f PF: > { %v1622_v1 = vld [vmem:[%s2669_s10 + $0x70] sm:$0xf]  ;;  %v2098_v2 = vld [vmem:[%s2669_s10 + $0x74] sm:$0xf0]  ;;  %v1614_v12 = vld [vmem:[%s2669_s10 + $0x60] sm:$0xf] }
  0x40   : > { %v1686_v3 = vld [vmem:[%s2669_s10 + $0xf0] sm:$0xf]  ;;  %v1623_v4 = vor.u32 %v2098_v2, %v1622_v1  ;;  %v2114_v5 = vld [vmem:[%s2669_s10 + $0xf4] sm:$0xf0]  ;;  %v2096_v14 = vld [vmem:[%s2669_s10 + $0x64] sm:$0xf0] }
  0x41   : > { %v1750_v6 = vld [vmem:[%s2669_s10 + $0x170] sm:$0xf]  ;;  %v2130_v7 = vld [vmem:[%s2669_s10 + $0x174] sm:$0xf0]  ;;  %v1687_v8 = vor.u32 %v2114_v5, %v1686_v3  ;;  %v1678_v15 = vld [vmem:[%s2669_s10 + $0xe0] sm:$0xf]  ;;  %v1615_v17 = vor.u32 %v2096_v14, %v1614_v12 }
  0x42   : > { %v1751_v9 = vor.u32 %v2130_v7, %v1750_v6  ;;  %v1814_v10 = vld [vmem:[%s2669_s10 + $0x1f0] sm:$0xf]  ;;  %v2146_v11 = vld [vmem:[%s2669_s10 + $0x1f4] sm:$0xf0]  ;;  %1164 = vmatpush.bf16.msra.mxu0 %v1623_v4  ;;  %v2112_v16 = vld [vmem:[%s2669_s10 + $0xe4] sm:$0xf0] }
  0x43   : > { %v1815_v13 = vor.u32 %v2146_v11, %v1814_v10  ;;  %1177 = vmatpush.bf16.msra.mxu1 %v1687_v8  ;;  %v1679_v18 = vor.u32 %v2112_v16, %v1678_v15  ;;  %v1742_v19 = vld [vmem:[%s2669_s10 + $0x160] sm:$0xf]  ;;  %v2128_v20 = vld [vmem:[%s2669_s10 + $0x164] sm:$0xf0]  ;;  %v1606_v24 = vld [vmem:[%s2669_s10 + $0x50] sm:$0xf] }
  0x44   : > { %1190 = vmatpush.bf16.msra.mxu2 %v1751_v9  ;;  %v1806_v21 = vld [vmem:[%s2669_s10 + $0x1e0] sm:$0xf]  ;;  %v1743_v22 = vor.u32 %v2128_v20, %v1742_v19  ;;  %v2144_v23 = vld [vmem:[%s2669_s10 + $0x1e4] sm:$0xf0]  ;;  %v2094_v25 = vld [vmem:[%s2669_s10 + $0x54] sm:$0xf0] }
  0x45   : > { %1203 = vmatpush.bf16.msra.mxu3 %v1815_v13  ;;  %v1807_v26 = vor.u32 %v2144_v23, %v1806_v21  ;;  %v1670_v27 = vld [vmem:[%s2669_s10 + $0xd0] sm:$0xf]  ;;  %v2110_v28 = vld [vmem:[%s2669_s10 + $0xd4] sm:$0xf0]  ;;  %v1607_v30 = vor.u32 %v2094_v25, %v1606_v24  ;;  %v1598_v36 = vld [vmem:[%s2669_s10 + $0x40] sm:$0xf] }
  0x46   : > { %v1734_v29 = vld [vmem:[%s2669_s10 + $0x150] sm:$0xf]  ;;  %1165 = vmatpush.bf16.msra.mxu0 %v1615_v17  ;;  %v2126_v31 = vld [vmem:[%s2669_s10 + $0x154] sm:$0xf0]  ;;  %v1671_v34 = vor.u32 %v2110_v28, %v1670_v27  ;;  %v2092_v37 = vld [vmem:[%s2669_s10 + $0x44] sm:$0xf0] }
  0x47   : > { %v1798_v32 = vld [vmem:[%s2669_s10 + $0x1d0] sm:$0xf]  ;;  %v2142_v33 = vld [vmem:[%s2669_s10 + $0x1d4] sm:$0xf0]  ;;  %1178 = vmatpush.bf16.msra.mxu1 %v1679_v18  ;;  %v1735_v35 = vor.u32 %v2126_v31, %v1734_v29  ;;  %v1662_v38 = vld [vmem:[%s2669_s10 + $0xc0] sm:$0xf]  ;;  %v1599_v45 = vor.u32 %v2092_v37, %v1598_v36 }
  0x48   : > { %1191 = vmatpush.bf16.msra.mxu2 %v1743_v22  ;;  %v1799_v39 = vor.u32 %v2142_v33, %v1798_v32  ;;  %v2108_v40 = vld [vmem:[%s2669_s10 + $0xc4] sm:$0xf0]  ;;  %v1726_v41 = vld [vmem:[%s2669_s10 + $0x140] sm:$0xf]  ;;  %v1590_v48 = vld [vmem:[%s2669_s10 + $0x30] sm:$0xf] }
  0x49   : > { %1204 = vmatpush.bf16.msra.mxu3 %v1807_v26  ;;  %v2124_v42 = vld [vmem:[%s2669_s10 + $0x144] sm:$0xf0]  ;;  %v1790_v43 = vld [vmem:[%s2669_s10 + $0x1c0] sm:$0xf]  ;;  %v1663_v46 = vor.u32 %v2108_v40, %v1662_v38  ;;  %v2090_v49 = vld [vmem:[%s2669_s10 + $0x34] sm:$0xf0] }
  0x4a   : > { %v2140_v44 = vld [vmem:[%s2669_s10 + $0x1c4] sm:$0xf0]  ;;  %1166 = vmatpush.bf16.msra.mxu0 %v1607_v30  ;;  %v1727_v47 = vor.u32 %v2124_v42, %v1726_v41  ;;  %v1654_v50 = vld [vmem:[%s2669_s10 + $0xb0] sm:$0xf]  ;;  %v2106_v52 = vld [vmem:[%s2669_s10 + $0xb4] sm:$0xf0]  ;;  %v1591_v57 = vor.u32 %v2090_v49, %v1590_v48 }
  0x4b   : > { %1179 = vmatpush.bf16.msra.mxu1 %v1671_v34  ;;  %v1791_v51 = vor.u32 %v2140_v44, %v1790_v43  ;;  %v1718_v53 = vld [vmem:[%s2669_s10 + $0x130] sm:$0xf]  ;;  %v2122_v54 = vld [vmem:[%s2669_s10 + $0x134] sm:$0xf0]  ;;  %v1655_v58 = vor.u32 %v2106_v52, %v1654_v50  ;;  %v1582_v60 = vld [vmem:[%s2669_s10 + $0x20] sm:$0xf] }
  0x4c   : > { %1192 = vmatpush.bf16.msra.mxu2 %v1735_v35  ;;  %v1782_v55 = vld [vmem:[%s2669_s10 + $0x1b0] sm:$0xf]  ;;  %v2138_v56 = vld [vmem:[%s2669_s10 + $0x1b4] sm:$0xf0]  ;;  %v1719_v59 = vor.u32 %v2122_v54, %v1718_v53  ;;  %v2088_v61 = vld [vmem:[%s2669_s10 + $0x24] sm:$0xf0] }
  0x4d   : > { %1205 = vmatpush.bf16.msra.mxu3 %v1799_v39  ;;  %v1646_v62 = vld [vmem:[%s2669_s10 + $0xa0] sm:$0xf]  ;;  %v1783_v63 = vor.u32 %v2138_v56, %v1782_v55  ;;  %v2104_v0 = vld [vmem:[%s2669_s10 + $0xa4] sm:$0xf0]  ;;  %v1583_v5 = vor.u32 %v2088_v61, %v1582_v60  ;;  %v1574_v8 = vld [vmem:[%s2669_s10 + $0x10] sm:$0xf] }
  0x4e   : > { %1167 = vmatpush.bf16.msra.mxu0 %v1599_v45  ;;  %v1710_v1 = vld [vmem:[%s2669_s10 + $0x120] sm:$0xf]  ;;  %v2120_v2 = vld [vmem:[%s2669_s10 + $0x124] sm:$0xf0]  ;;  %v1647_v6 = vor.u32 %v2104_v0, %v1646_v62  ;;  %v2086_v9 = vld [vmem:[%s2669_s10 + $0x14] sm:$0xf0] }
  0x4f   : > { %1180 = vmatpush.bf16.msra.mxu1 %v1663_v46  ;;  %v1774_v3 = vld [vmem:[%s2669_s10 + $0x1a0] sm:$0xf]  ;;  %v2136_v4 = vld [vmem:[%s2669_s10 + $0x1a4] sm:$0xf0]  ;;  %v1711_v7 = vor.u32 %v2120_v2, %v1710_v1  ;;  %v1638_v10 = vld [vmem:[%s2669_s10 + $0x90] sm:$0xf]  ;;  %v1575_v17 = vor.u32 %v2086_v9, %v1574_v8 }
  0x50   : > { %1193 = vmatpush.bf16.msra.mxu2 %v1727_v47  ;;  %v1775_v11 = vor.u32 %v2136_v4, %v1774_v3  ;;  %v2102_v12 = vld [vmem:[%s2669_s10 + $0x94] sm:$0xf0]  ;;  %v1702_v13 = vld [vmem:[%s2669_s10 + $0x110] sm:$0xf]  ;;  %v1566_v18 = vld [vmem:[%s2669_s10] sm:$0xf] }
  0x51   : > { %1206 = vmatpush.bf16.msra.mxu3 %v1791_v51  ;;  %v2118_v14 = vld [vmem:[%s2669_s10 + $0x114] sm:$0xf0]  ;;  %v1766_v15 = vld [vmem:[%s2669_s10 + $0x190] sm:$0xf]  ;;  %v2084_v19 = vld [vmem:[%s2669_s10 + $0x4] sm:$0xf0]  ;;  %v1639_v20 = vor.u32 %v2102_v12, %v1638_v10 }
  0x52   : > { %1168 = vmatpush.bf16.msra.mxu0 %v1591_v57  ;;  %v2134_v16 = vld [vmem:[%s2669_s10 + $0x194] sm:$0xf0]  ;;  %v1703_v21 = vor.u32 %v2118_v14, %v1702_v13  ;;  %v1630_v22 = vld [vmem:[%s2669_s10 + $0x80] sm:$0xf]  ;;  %v2100_v23 = vld [vmem:[%s2669_s10 + $0x84] sm:$0xf0]  ;;  %v1567_v32 = vor.u32 %v2084_v19, %v1566_v18 }
  0x53   : > { %1181 = vmatpush.bf16.msra.mxu1 %v1655_v58  ;;  %v1694_v24 = vld [vmem:[%s2669_s10 + $0x100] sm:$0xf]  ;;  %v1767_v25 = vor.u32 %v2134_v16, %v1766_v15  ;;  %v2116_v26 = vld [vmem:[%s2669_s10 + $0x104] sm:$0xf0]  ;;  %v1878_v29 = vld [vmem:[%s2669_s10 + $0x270] sm:$0xf]  ;;  %v1631_v36 = vor.u32 %v2100_v23, %v1630_v22 }
  0x54   : > { %1194 = vmatpush.bf16.msra.mxu2 %v1719_v59  ;;  %v1758_v27 = vld [vmem:[%s2669_s10 + $0x180] sm:$0xf]  ;;  %v2132_v28 = vld [vmem:[%s2669_s10 + $0x184] sm:$0xf0]  ;;  %v2162_v30 = vld [vmem:[%s2669_s10 + $0x274] sm:$0xf0]  ;;  %v1695_v37 = vor.u32 %v2116_v26, %v1694_v24 }
  0x55   : > { %1207 = vmatpush.bf16.msra.mxu3 %v1783_v63  ;;  %v1942_v31 = vld [vmem:[%s2669_s10 + $0x2f0] sm:$0xf]  ;;  %v2178_v33 = vld [vmem:[%s2669_s10 + $0x2f4] sm:$0xf0]  ;;  %v1759_v40 = vor.u32 %v2132_v28, %v1758_v27  ;;  %v1879_v41 = vor.u32 %v2162_v30, %v1878_v29  ;;  %v1870_v44 = vld [vmem:[%s2669_s10 + $0x260] sm:$0xf] }
  0x56   : > { %1169 = vmatpush.bf16.msra.mxu0 %v1583_v5  ;;  %v2006_v34 = vld [vmem:[%s2669_s10 + $0x370] sm:$0xf]  ;;  %v2194_v35 = vld [vmem:[%s2669_s10 + $0x374] sm:$0xf0]  ;;  %v1943_v42 = vor.u32 %v2178_v33, %v1942_v31  ;;  %v2160_v45 = vld [vmem:[%s2669_s10 + $0x264] sm:$0xf0] }
  0x57   : > { %1182 = vmatpush.bf16.msra.mxu1 %v1647_v6  ;;  %v2070_v38 = vld [vmem:[%s2669_s10 + $0x3f0] sm:$0xf]  ;;  %v2210_v39 = vld [vmem:[%s2669_s10 + $0x3f4] sm:$0xf0]  ;;  %v2007_v43 = vor.u32 %v2194_v35, %v2006_v34  ;;  %v1934_v46 = vld [vmem:[%s2669_s10 + $0x2e0] sm:$0xf]  ;;  %v1871_v53 = vor.u32 %v2160_v45, %v1870_v44 }
  0x58   : > { %1195 = vmatpush.bf16.msra.mxu2 %v1711_v7  ;;  %v2071_v47 = vor.u32 %v2210_v39, %v2070_v38  ;;  %v2176_v48 = vld [vmem:[%s2669_s10 + $0x2e4] sm:$0xf0]  ;;  %v1998_v49 = vld [vmem:[%s2669_s10 + $0x360] sm:$0xf]  ;;  %v1862_v54 = vld [vmem:[%s2669_s10 + $0x250] sm:$0xf] }
  0x59   : > { %1208 = vmatpush.bf16.msra.mxu3 %v1775_v11  ;;  %v2192_v50 = vld [vmem:[%s2669_s10 + $0x364] sm:$0xf0]  ;;  %v2062_v51 = vld [vmem:[%s2669_s10 + $0x3e0] sm:$0xf]  ;;  %v1935_v55 = vor.u32 %v2176_v48, %v1934_v46  ;;  %v2158_v57 = vld [vmem:[%s2669_s10 + $0x254] sm:$0xf0] }
  0x5a   : > { %1170 = vmatpush.bf16.msra.mxu0 %v1575_v17  ;;  %v2208_v52 = vld [vmem:[%s2669_s10 + $0x3e4] sm:$0xf0]  ;;  %v1999_v56 = vor.u32 %v2192_v50, %v1998_v49  ;;  %v1926_v58 = vld [vmem:[%s2669_s10 + $0x2d0] sm:$0xf]  ;;  %v2174_v61 = vld [vmem:[%s2669_s10 + $0x2d4] sm:$0xf0]  ;;  %v1863_v4 = vor.u32 %v2158_v57, %v1862_v54 }
  0x5b   : > { %1183 = vmatpush.bf16.msra.mxu1 %v1639_v20  ;;  %v359_v59 = vld [vmem:[#allocation4 + $0x8] sm:$0xff]  ;;  %v2063_v60 = vor.u32 %v2208_v52, %v2062_v51  ;;  %v1990_v62 = vld [vmem:[%s2669_s10 + $0x350] sm:$0xf]  ;;  %v2190_v63 = vld [vmem:[%s2669_s10 + $0x354] sm:$0xf0]  ;;  %v1927_v8 = vor.u32 %v2174_v61, %v1926_v58  ;;  %p2076_p2 = scmp.ne.s32.totalorder %s2504_s23, 3 }
  0x5c   : > { %1196 = vmatpush.bf16.msra.mxu2 %v1703_v21  ;;  %v502_v0 = vunpack.c.l.b16 %v359_v59  ;;  %v503_v1 = vunpack.c.h.b16 %v359_v59  ;;  %v2054_v2 = vld [vmem:[%s2669_s10 + $0x3d0] sm:$0xf]  ;;  %v2206_v3 = vld [vmem:[%s2669_s10 + $0x3d4] sm:$0xf0]  ;;  %v358_v6 = vld [vmem:[#allocation4] sm:$0xff]  ;;  %v1991_v9 = vor.u32 %v2190_v63, %v1990_v62  ;;  %s1395_s27 = sld [smem:[#allocation3]] (!%p2076_p2) }
  0x5d   : > { %1209 = vmatpush.bf16.msra.mxu3 %v1767_v25  ;;  %v1854_v10 = vld [vmem:[%s2669_s10 + $0x240] sm:$0xf]  ;;  %v2156_v11 = vld [vmem:[%s2669_s10 + $0x244] sm:$0xf0]  ;;  %v500_v13 = vunpack.c.l.b16 %v358_v6  ;;  %v501_v14 = vunpack.c.h.b16 %v358_v6  ;;  %v2055_v15 = vor.u32 %v2206_v3, %v2054_v2  ;;  %v1846_v26 = vld [vmem:[%s2669_s10 + $0x230] sm:$0xf] }
  0x5e   : > { %1171 = vmatpush.bf16.msra.mxu0 %v1567_v32  ;;  %v2772_v5 = vpack.c.b16 %v502_v0, %v502_v0  ;;  %v2774_v7 = vpack.c.b16 %v503_v1, %v503_v1  ;;  %v1918_v12 = vld [vmem:[%s2669_s10 + $0x2c0] sm:$0xf]  ;;  %v2172_v16 = vld [vmem:[%s2669_s10 + $0x2c4] sm:$0xf0]  ;;  %v1855_v23 = vor.u32 %v2156_v11, %v1854_v10  ;;  %v2154_v27 = vld [vmem:[%s2669_s10 + $0x234] sm:$0xf0] }
  0x5f   : > { %1184 = vmatpush.bf16.msra.mxu1 %v1631_v36  ;;  %v1982_v17 = vld [vmem:[%s2669_s10 + $0x340] sm:$0xf]  ;;  %v2188_v18 = vld [vmem:[%s2669_s10 + $0x344] sm:$0xf0]  ;;  %v2785_v21 = vpack.c.b16 %v500_v13, %v500_v13  ;;  %v2788_v22 = vpack.c.b16 %v501_v14, %v501_v14  ;;  %v1919_v24 = vor.u32 %v2172_v16, %v1918_v12  ;;  %v1910_v28 = vld [vmem:[%s2669_s10 + $0x2b0] sm:$0xf]  ;;  %v1847_v35 = vor.u32 %v2154_v27, %v1846_v26 }
  0x60   : > { %1197 = vmatpush.bf16.msra.mxu2 %v1695_v37  ;;  %v2046_v19 = vld [vmem:[%s2669_s10 + $0x3c0] sm:$0xf]  ;;  %v2204_v20 = vld [vmem:[%s2669_s10 + $0x3c4] sm:$0xf0]  ;;  %v1983_v25 = vor.u32 %v2188_v18, %v1982_v17  ;;  %v2170_v30 = vld [vmem:[%s2669_s10 + $0x2b4] sm:$0xf0] }
  0x61   : > { %1210 = vmatpush.bf16.msra.mxu3 %v1759_v40  ;;  %v2047_v29 = vor.u32 %v2204_v20, %v2046_v19  ;;  %v1974_v31 = vld [vmem:[%s2669_s10 + $0x330] sm:$0xf]  ;;  %v2186_v32 = vld [vmem:[%s2669_s10 + $0x334] sm:$0xf0]  ;;  %1172 = vmatmul.bf16.vlgmr.msra.gmra.mxu0 %v2785_v21  ;;  %v1911_v36 = vor.u32 %v2170_v30, %v1910_v28  ;;  %v1838_v38 = vld [vmem:[%s2669_s10 + $0x220] sm:$0xf] }
  0x62   : > { %1216 = vmatpush.bf16.msrb.mxu0 %v1879_v41  ;;  %v2038_v33 = vld [vmem:[%s2669_s10 + $0x3b0] sm:$0xf]  ;;  %v2202_v34 = vld [vmem:[%s2669_s10 + $0x3b4] sm:$0xf0]  ;;  %1185 = vmatmul.bf16.vlgmr.msra.gmra.mxu1 %v2788_v22  ;;  %v1975_v37 = vor.u32 %v2186_v32, %v1974_v31  ;;  %v2152_v39 = vld [vmem:[%s2669_s10 + $0x224] sm:$0xf0] }
  0x63   : > { %1229 = vmatpush.bf16.msrb.mxu1 %v1943_v42  ;;  %1198 = vmatmul.bf16.vlgmr.msra.gmra.mxu2 %v2772_v5  ;;  %v1902_v40 = vld [vmem:[%s2669_s10 + $0x2a0] sm:$0xf]  ;;  %v2039_v41 = vor.u32 %v2202_v34, %v2038_v33  ;;  %v2168_v42 = vld [vmem:[%s2669_s10 + $0x2a4] sm:$0xf0]  ;;  %v1830_v50 = vld [vmem:[%s2669_s10 + $0x210] sm:$0xf] }
  0x64   : > { %1242 = vmatpush.bf16.msrb.mxu2 %v2007_v43  ;;  %1211 = vmatmul.bf16.vlgmr.msra.gmra.mxu3 %v2774_v7  ;;  %v1966_v43 = vld [vmem:[%s2669_s10 + $0x320] sm:$0xf]  ;;  %v2184_v44 = vld [vmem:[%s2669_s10 + $0x324] sm:$0xf0]  ;;  %v1903_v48 = vor.u32 %v2168_v42, %v1902_v40  ;;  %v2150_v51 = vld [vmem:[%s2669_s10 + $0x214] sm:$0xf0] }
  0x65   : > { %1255 = vmatpush.bf16.msrb.mxu3 %v2071_v47  ;;  %v2030_v45 = vld [vmem:[%s2669_s10 + $0x3a0] sm:$0xf]  ;;  %v2200_v46 = vld [vmem:[%s2669_s10 + $0x3a4] sm:$0xf0]  ;;  %v1839_v47 = vor.u32 %v2152_v39, %v1838_v38  ;;  %v1967_v49 = vor.u32 %v2184_v44, %v1966_v43  ;;  %v1894_v52 = vld [vmem:[%s2669_s10 + $0x290] sm:$0xf] }
  0x66   : > { %1217 = vmatpush.bf16.msrb.mxu0 %v1871_v53  ;;  %v2031_v53 = vor.u32 %v2200_v46, %v2030_v45  ;;  %v2166_v54 = vld [vmem:[%s2669_s10 + $0x294] sm:$0xf0]  ;;  %v2022_v57 = vld [vmem:[%s2669_s10 + $0x390] sm:$0xf]  ;;  %v1822_v59 = vld [vmem:[%s2669_s10 + $0x200] sm:$0xf] }
  0x67   : > { %1230 = vmatpush.bf16.msrb.mxu1 %v1935_v55  ;;  %v1958_v55 = vld [vmem:[%s2669_s10 + $0x310] sm:$0xf]  ;;  %v2198_v58 = vld [vmem:[%s2669_s10 + $0x394] sm:$0xf0]  ;;  %v2148_v61 = vld [vmem:[%s2669_s10 + $0x204] sm:$0xf0]  ;;  %v1895_v0 = vor.u32 %v2166_v54, %v1894_v52 }
  0x68   : > { %1243 = vmatpush.bf16.msrb.mxu2 %v1999_v56  ;;  %v2182_v56 = vld [vmem:[%s2669_s10 + $0x314] sm:$0xf0]  ;;  %v1886_v62 = vld [vmem:[%s2669_s10 + $0x280] sm:$0xf]  ;;  %v2164_v63 = vld [vmem:[%s2669_s10 + $0x284] sm:$0xf0]  ;;  %v2023_v6 = vor.u32 %v2198_v58, %v2022_v57  ;;  %v1823_v14 = vor.u32 %v2148_v61, %v1822_v59 }
  0x69   : > { %1256 = vmatpush.bf16.msrb.mxu3 %v2063_v60  ;;  %v1831_v60 = vor.u32 %v2150_v51, %v1830_v50  ;;  %v1959_v1 = vor.u32 %v2182_v56, %v1958_v55  ;;  %v1950_v2 = vld [vmem:[%s2669_s10 + $0x300] sm:$0xf]  ;;  %v2180_v3 = vld [vmem:[%s2669_s10 + $0x304] sm:$0xf0]  ;;  %v360_v10 = vld [vmem:[#allocation4 + $0x10] sm:$0xff]  ;;  %v1887_v19 = vor.u32 %v2164_v63, %v1886_v62 }
  0x6a   : > { %1218 = vmatpush.bf16.msrb.mxu0 %v1863_v4  ;;  %v361_v4 = vld [vmem:[#allocation4 + $0x18] sm:$0xff]  ;;  %v2097_v11 = vld [vmem:[%s2669_s10 + $0x74] sm:$0xf]  ;;  %v1951_v20 = vor.u32 %v2180_v3, %v1950_v2  ;;  %v2095_v32 = vld [vmem:[%s2669_s10 + $0x64] sm:$0xf] }
  0x6b   : > { %1231 = vmatpush.bf16.msrb.mxu1 %v1927_v8  ;;  %v2014_v8 = vld [vmem:[%s2669_s10 + $0x380] sm:$0xf]  ;;  %v1624_v12 = vld [vmem:[%s2669_s10 + $0x78] sm:$0xf0]  ;;  %v2113_v13 = vld [vmem:[%s2669_s10 + $0xf4] sm:$0xf]  ;;  %v506_v18 = vunpack.c.l.b16 %v361_v4  ;;  %v507_v26 = vunpack.c.h.b16 %v361_v4 }
  0x6c   : > { %1244 = vmatpush.bf16.msrb.mxu2 %v1991_v9  ;;  %v2196_v9 = vld [vmem:[%s2669_s10 + $0x384] sm:$0xf0]  ;;  %v2129_v16 = vld [vmem:[%s2669_s10 + $0x174] sm:$0xf]  ;;  %v1752_v17 = vld [vmem:[%s2669_s10 + $0x178] sm:$0xf0]  ;;  %v1627_v28 = vor.u32 %v2097_v11, %v1624_v12 }
  0x6d   : > { %1257 = vmatpush.bf16.msrb.mxu3 %v2055_v15  ;;  %v1688_v15 = vld [vmem:[%s2669_s10 + $0xf8] sm:$0xf0]  ;;  %v2015_v27 = vor.u32 %v2196_v9, %v2014_v8  ;;  %v1755_v31 = vor.u32 %v2129_v16, %v1752_v17  ;;  %v1616_v33 = vld [vmem:[%s2669_s10 + $0x68] sm:$0xf0]  ;;  %v2111_v34 = vld [vmem:[%s2669_s10 + $0xe4] sm:$0xf]  ;;  %v2838_v39 = vpack.c.b16 %v506_v18, %v506_v18  ;;  %v2844_v43 = vpack.c.b16 %v507_v26, %v507_v26 }
  0x6e   : > { %1219 = vmatpush.bf16.msrb.mxu0 %v1855_v23  ;;  %v2145_v23 = vld [vmem:[%s2669_s10 + $0x1f4] sm:$0xf]  ;;  %v1691_v30 = vor.u32 %v2113_v13, %v1688_v15  ;;  %v1744_v38 = vld [vmem:[%s2669_s10 + $0x168] sm:$0xf0]  ;;  %v2143_v40 = vld [vmem:[%s2669_s10 + $0x1e4] sm:$0xf]  ;;  %v1619_v44 = vor.u32 %v2095_v32, %v1616_v33 }
  0x6f   : > { %1232 = vmatpush.bf16.msrb.mxu1 %v1919_v24  ;;  %v1816_v24 = vld [vmem:[%s2669_s10 + $0x1f8] sm:$0xf0]  ;;  %v2109_v50 = vld [vmem:[%s2669_s10 + $0xd4] sm:$0xf]  ;;  %v1600_v61 = vld [vmem:[%s2669_s10 + $0x48] sm:$0xf0] }
  0x70   : > { %1245 = vmatpush.bf16.msrb.mxu2 %v1983_v25  ;;  %v504_v25 = vunpack.c.l.b16 %v360_v10  ;;  %v1672_v52 = vld [vmem:[%s2669_s10 + $0xd8] sm:$0xf0]  ;;  %v2141_v55 = vld [vmem:[%s2669_s10 + $0x1d4] sm:$0xf]  ;;  %v2107_v62 = vld [vmem:[%s2669_s10 + $0xc4] sm:$0xf] }
  0x71   : > { %1258 = vmatpush.bf16.msrb.mxu3 %v2047_v29  ;;  %v505_v29 = vunpack.c.h.b16 %v360_v10  ;;  %v1736_v54 = vld [vmem:[%s2669_s10 + $0x158] sm:$0xf0]  ;;  %v1675_v58 = vor.u32 %v2109_v50, %v1672_v52  ;;  %v1728_v2 = vld [vmem:[%s2669_s10 + $0x148] sm:$0xf0]  ;;  %v2139_v3 = vld [vmem:[%s2669_s10 + $0x1c4] sm:$0xf] }
  0x72   : > { %1220 = vmatpush.bf16.msrb.mxu0 %v1847_v35  ;;  %v1819_v35 = vor.u32 %v2145_v23, %v1816_v24  ;;  %v2842_v42 = vpack.c.b16 %v504_v25, %v504_v25  ;;  %v1800_v56 = vld [vmem:[%s2669_s10 + $0x1d8] sm:$0xf0]  ;;  %v1792_v4 = vld [vmem:[%s2669_s10 + $0x1c8] sm:$0xf0]  ;;  %v2089_v10 = vld [vmem:[%s2669_s10 + $0x34] sm:$0xf] }
  0x73   : > { %1233 = vmatpush.bf16.msrb.mxu1 %v1911_v36  ;;  %v1680_v36 = vld [vmem:[%s2669_s10 + $0xe8] sm:$0xf0]  ;;  %v2846_v45 = vpack.c.b16 %v505_v29, %v505_v29  ;;  %v1803_v63 = vor.u32 %v2141_v55, %v1800_v56  ;;  %v1592_v11 = vld [vmem:[%s2669_s10 + $0x38] sm:$0xf0]  ;;  %v2105_v12 = vld [vmem:[%s2669_s10 + $0xb4] sm:$0xf]  ;;  %v1795_v13 = vor.u32 %v2139_v3, %v1792_v4 }
  0x74   : > { %1246 = vmatpush.bf16.msrb.mxu2 %v1975_v37  ;;  %v2127_v37 = vld [vmem:[%s2669_s10 + $0x164] sm:$0xf]  ;;  %v1683_v46 = vor.u32 %v2111_v34, %v1680_v36  ;;  %v2121_v15 = vld [vmem:[%s2669_s10 + $0x134] sm:$0xf]  ;;  %v1720_v16 = vld [vmem:[%s2669_s10 + $0x138] sm:$0xf0] }
  0x75   : > { %1259 = vmatpush.bf16.msrb.mxu3 %v2039_v41  ;;  %v1808_v41 = vld [vmem:[%s2669_s10 + $0x1e8] sm:$0xf0]  ;;  %v2137_v17 = vld [vmem:[%s2669_s10 + $0x1b4] sm:$0xf]  ;;  %v1784_v18 = vld [vmem:[%s2669_s10 + $0x1b8] sm:$0xf0]  ;;  %v1723_v23 = vor.u32 %v2121_v15, %v1720_v16 }
  0x76   : > { %1221 = vmatpush.bf16.msrb.mxu0 %v1839_v47  ;;  %v1747_v47 = vor.u32 %v2127_v37, %v1744_v38  ;;  %v1811_v51 = vor.u32 %v2143_v40, %v1808_v41  ;;  %v2087_v24 = vld [vmem:[%s2669_s10 + $0x24] sm:$0xf]  ;;  %v1584_v25 = vld [vmem:[%s2669_s10 + $0x28] sm:$0xf0]  ;;  %v2085_v36 = vld [vmem:[%s2669_s10 + $0x14] sm:$0xf] }
  0x77   : > { %1234 = vmatpush.bf16.msrb.mxu1 %v1903_v48  ;;  %v2093_v48 = vld [vmem:[%s2669_s10 + $0x54] sm:$0xf]  ;;  %v2103_v26 = vld [vmem:[%s2669_s10 + $0xa4] sm:$0xf]  ;;  %v1776_v32 = vld [vmem:[%s2669_s10 + $0x1a8] sm:$0xf0]  ;;  %v1587_v33 = vor.u32 %v2087_v24, %v1584_v25 }
  0x78   : > { %1247 = vmatpush.bf16.msrb.mxu2 %v1967_v49  ;;  %v1608_v49 = vld [vmem:[%s2669_s10 + $0x58] sm:$0xf0]  ;;  %v2119_v29 = vld [vmem:[%s2669_s10 + $0x124] sm:$0xf]  ;;  %v2101_v38 = vld [vmem:[%s2669_s10 + $0x94] sm:$0xf] }
  0x79   : > { %1260 = vmatpush.bf16.msrb.mxu3 %v2031_v53  ;;  %v2125_v53 = vld [vmem:[%s2669_s10 + $0x154] sm:$0xf]  ;;  %v1611_v57 = vor.u32 %v2093_v48, %v1608_v49  ;;  %v1576_v37 = vld [vmem:[%s2669_s10 + $0x18] sm:$0xf0]  ;;  %v2083_v50 = vld [vmem:[%s2669_s10 + $0x4] sm:$0xf] }
  0x7a   : > { %1222 = vmatpush.bf16.msrb.mxu0 %v1831_v60  ;;  %v1739_v59 = vor.u32 %v2125_v53, %v1736_v54  ;;  %v2091_v60 = vld [vmem:[%s2669_s10 + $0x44] sm:$0xf]  ;;  %v1640_v41 = vld [vmem:[%s2669_s10 + $0x98] sm:$0xf0]  ;;  %v1579_v49 = vor.u32 %v2085_v36, %v1576_v37  ;;  %v1632_v55 = vld [vmem:[%s2669_s10 + $0x88] sm:$0xf0] }
  0x7b   : > { %1235 = vmatpush.bf16.msrb.mxu1 %v1895_v0  ;;  %v1664_v0 = vld [vmem:[%s2669_s10 + $0xc8] sm:$0xf0]  ;;  %v1768_v48 = vld [vmem:[%s2669_s10 + $0x198] sm:$0xf0]  ;;  %v1643_v52 = vor.u32 %v2101_v38, %v1640_v41  ;;  %v2099_v54 = vld [vmem:[%s2669_s10 + $0x84] sm:$0xf] }
  0x7c   : > { %1248 = vmatpush.bf16.msrb.mxu2 %v1959_v1  ;;  %v2123_v1 = vld [vmem:[%s2669_s10 + $0x144] sm:$0xf]  ;;  %v1667_v8 = vor.u32 %v2107_v62, %v1664_v0  ;;  %v1880_v62 = vld [vmem:[%s2669_s10 + $0x278] sm:$0xf0]  ;;  %v1635_v4 = vor.u32 %v2099_v54, %v1632_v55  ;;  %v1872_v15 = vld [vmem:[%s2669_s10 + $0x268] sm:$0xf0] }
  0x7d   : > { %1261 = vmatpush.bf16.msrb.mxu3 %v2023_v6  ;;  %v1603_v6 = vor.u32 %v2091_v60, %v1600_v61  ;;  %v1731_v9 = vor.u32 %v2123_v1, %v1728_v2  ;;  %v2115_v56 = vld [vmem:[%s2669_s10 + $0x104] sm:$0xf]  ;;  %v1760_v60 = vld [vmem:[%s2669_s10 + $0x188] sm:$0xf0]  ;;  %v2161_v61 = vld [vmem:[%s2669_s10 + $0x274] sm:$0xf] }
  0x7e   : > { %1223 = vmatpush.bf16.msrb.mxu0 %v1823_v14  ;;  %v1656_v14 = vld [vmem:[%s2669_s10 + $0xb8] sm:$0xf0]  ;;  %v2193_v2 = vld [vmem:[%s2669_s10 + $0x374] sm:$0xf]  ;;  %v2175_v16 = vld [vmem:[%s2669_s10 + $0x2e4] sm:$0xf] }
  0x7f   : > { %1236 = vmatpush.bf16.msrb.mxu1 %v1887_v19  ;;  %v1595_v19 = vor.u32 %v2089_v10, %v1592_v11  ;;  %v1944_v1 = vld [vmem:[%s2669_s10 + $0x2f8] sm:$0xf0]  ;;  %v1883_v11 = vor.u32 %v2161_v61, %v1880_v62  ;;  %v2064_v24 = vld [vmem:[%s2669_s10 + $0x3e8] sm:$0xf0]  ;;  %v2171_v41 = vld [vmem:[%s2669_s10 + $0x2c4] sm:$0xf] }
  0x80   : > { %1249 = vmatpush.bf16.msrb.mxu2 %v1951_v20  ;;  %v1659_v20 = vor.u32 %v2105_v12, %v1656_v14  ;;  %v2008_v3 = vld [vmem:[%s2669_s10 + $0x378] sm:$0xf0]  ;;  %v2159_v14 = vld [vmem:[%s2669_s10 + $0x264] sm:$0xf]  ;;  %v2169_v54 = vld [vmem:[%s2669_s10 + $0x2b4] sm:$0xf] }
  0x81   : > { %1262 = vmatpush.bf16.msrb.mxu3 %v2015_v27  ;;  %1224 = vmatmul.bf16.vlgmr.msrb.gmra.mxu0 %v2842_v42  ;;  %v1787_v27 = vor.u32 %v2137_v17, %v1784_v18  ;;  %v1936_v18 = vld [vmem:[%s2669_s10 + $0x2e8] sm:$0xf0]  ;;  %v1875_v25 = vor.u32 %v2159_v14, %v1872_v15  ;;  %v2056_v36 = vld [vmem:[%s2669_s10 + $0x3d8] sm:$0xf0]  ;;  %v2149_v14 = vld [vmem:[%s2669_s10 + $0x214] sm:$0xf] }
  0x82   : > { %1268 = vmatpush.bf16.msra.mxu0 %v1627_v28  ;;  %1237 = vmatmul.bf16.vlgmr.msrb.gmra.mxu1 %v2846_v45  ;;  %v1648_v28 = vld [vmem:[%s2669_s10 + $0xa8] sm:$0xf0]  ;;  %v1832_v15 = vld [vmem:[%s2669_s10 + $0x218] sm:$0xf0] }
  0x83   : > { %1281 = vmatpush.bf16.msra.mxu1 %v1691_v30  ;;  %1250 = vmatmul.bf16.vlgmr.msrb.gmra.mxu2 %v2838_v39  ;;  %v1712_v30 = vld [vmem:[%s2669_s10 + $0x128] sm:$0xf0]  ;;  %v1651_v34 = vor.u32 %v2103_v26, %v1648_v28  ;;  %v1939_v26 = vor.u32 %v2175_v16, %v1936_v18  ;;  %v2157_v28 = vld [vmem:[%s2669_s10 + $0x254] sm:$0xf]  ;;  %v1896_v18 = vld [vmem:[%s2669_s10 + $0x298] sm:$0xf0] }
  0x84   : > { %1294 = vmatpush.bf16.msra.mxu2 %v1755_v31  ;;  %1263 = vmatmul.bf16.vlgmr.msrb.gmra.mxu3 %v2844_v43  ;;  %v2135_v31 = vld [vmem:[%s2669_s10 + $0x1a4] sm:$0xf]  ;;  %v2165_v16 = vld [vmem:[%s2669_s10 + $0x294] sm:$0xf] }
  0x85   : > { %1307 = vmatpush.bf16.msra.mxu3 %v1819_v35  ;;  %v1715_v35 = vor.u32 %v2119_v29, %v1712_v30  ;;  %v1779_v40 = vor.u32 %v2135_v31, %v1776_v32  ;;  %v1864_v29 = vld [vmem:[%s2669_s10 + $0x258] sm:$0xf0]  ;;  %v2173_v30 = vld [vmem:[%s2669_s10 + $0x2d4] sm:$0xf] }
  0x86   : > { %1269 = vmatpush.bf16.msra.mxu0 %v1619_v44  ;;  %v2117_v44 = vld [vmem:[%s2669_s10 + $0x114] sm:$0xf]  ;;  %v1928_v32 = vld [vmem:[%s2669_s10 + $0x2d8] sm:$0xf0]  ;;  %v1867_v37 = vor.u32 %v2157_v28, %v1864_v29  ;;  %v2147_v28 = vld [vmem:[%s2669_s10 + $0x204] sm:$0xf] }
  0x87   : > { %1282 = vmatpush.bf16.msra.mxu1 %v1683_v46  ;;  %v1704_v46 = vld [vmem:[%s2669_s10 + $0x118] sm:$0xf0]  ;;  %v1824_v29 = vld [vmem:[%s2669_s10 + $0x208] sm:$0xf0] }
  0x88   : > { %1295 = vmatpush.bf16.msra.mxu2 %v1747_v47  ;;  %v2133_v47 = vld [vmem:[%s2669_s10 + $0x194] sm:$0xf]  ;;  %v1707_v53 = vor.u32 %v2117_v44, %v1704_v46  ;;  %v1920_v46 = vld [vmem:[%s2669_s10 + $0x2c8] sm:$0xf0] }
  0x89   : > { %1308 = vmatpush.bf16.msra.mxu3 %v1811_v51  ;;  %v1568_v51 = vld [vmem:[%s2669_s10 + $0x8] sm:$0xf0] }
  0x8a   : > { %1270 = vmatpush.bf16.msra.mxu0 %v1611_v57  ;;  %v1771_v57 = vor.u32 %v2133_v47, %v1768_v48  ;;  %v1571_v0 = vor.u32 %v2083_v50, %v1568_v51  ;;  %v1984_v47 = vld [vmem:[%s2669_s10 + $0x348] sm:$0xf0]  ;;  %v2203_v48 = vld [vmem:[%s2669_s10 + $0x3c4] sm:$0xf]  ;;  %v1923_v50 = vor.u32 %v2171_v41, %v1920_v46  ;;  %v490_v41 = vld [vmem:[%s2675_s4] sm:$0x3] }
  0x8b   : > { %1283 = vmatpush.bf16.msra.mxu1 %v1675_v58  ;;  %v1696_v58 = vld [vmem:[%s2669_s10 + $0x108] sm:$0xf0] }
  0x8c   : > { %1296 = vmatpush.bf16.msra.mxu2 %v1739_v59  ;;  %v2131_v59 = vld [vmem:[%s2669_s10 + $0x184] sm:$0xf] }
  0x8d   : > { %1309 = vmatpush.bf16.msra.mxu3 %v1803_v63  ;;  %v2177_v63 = vld [vmem:[%s2669_s10 + $0x2f4] sm:$0xf]  ;;  %v1763_v10 = vor.u32 %v2131_v59, %v1760_v60  ;;  %v2040_v60 = vld [vmem:[%s2669_s10 + $0x3b8] sm:$0xf0] }
  0x8e   : > { %1271 = vmatpush.bf16.msra.mxu0 %v1603_v6  ;;  %v1699_v6 = vor.u32 %v2115_v56, %v1696_v58  ;;  %v1947_v12 = vor.u32 %v2177_v63, %v1944_v1  ;;  %v1912_v56 = vld [vmem:[%s2669_s10 + $0x2b8] sm:$0xf0]  ;;  %v2201_v59 = vld [vmem:[%s2669_s10 + $0x3b4] sm:$0xf]  ;;  %v1840_v1 = vld [vmem:[%s2669_s10 + $0x228] sm:$0xf0] }
  0x8f   : > { %1284 = vmatpush.bf16.msra.mxu1 %v1667_v8  ;;  %v2209_v8 = vld [vmem:[%s2669_s10 + $0x3f4] sm:$0xf]  ;;  %v1976_v58 = vld [vmem:[%s2669_s10 + $0x338] sm:$0xf0]  ;;  %v1915_v62 = vor.u32 %v2169_v54, %v1912_v56 }
  0x90   : > { %1297 = vmatpush.bf16.msra.mxu2 %v1731_v9  ;;  %v2072_v9 = vld [vmem:[%s2669_s10 + $0x3f8] sm:$0xf0] }
  0x91   : > { %1310 = vmatpush.bf16.msra.mxu3 %v1795_v13  ;;  %v2011_v13 = vor.u32 %v2193_v2, %v2008_v3  ;;  %v2075_v17 = vor.u32 %v2209_v8, %v2072_v9  ;;  %v2167_v2 = vld [vmem:[%s2669_s10 + $0x2a4] sm:$0xf]  ;;  %v2043_v3 = vor.u32 %v2201_v59, %v2040_v60  ;;  %v1968_v8 = vld [vmem:[%s2669_s10 + $0x328] sm:$0xf0] }
  0x92   : > { %1272 = vmatpush.bf16.msra.mxu0 %v1595_v19  ;;  %v2191_v19 = vld [vmem:[%s2669_s10 + $0x364] sm:$0xf] }
  0x93   : > { %1285 = vmatpush.bf16.msra.mxu1 %v1659_v20  ;;  %v2000_v20 = vld [vmem:[%s2669_s10 + $0x368] sm:$0xf0]  ;;  %v2199_v9 = vld [vmem:[%s2669_s10 + $0x3a4] sm:$0xf] }
  0x94   : > { %1298 = vmatpush.bf16.msra.mxu2 %v1723_v23  ;;  %v2207_v23 = vld [vmem:[%s2669_s10 + $0x3e4] sm:$0xf] }
  0x95   : > { %1311 = vmatpush.bf16.msra.mxu3 %v1787_v27  ;;  %v2003_v27 = vor.u32 %v2191_v19, %v2000_v20  ;;  %v2067_v31 = vor.u32 %v2207_v23, %v2064_v24  ;;  %v2181_v19 = vld [vmem:[%s2669_s10 + $0x314] sm:$0xf]  ;;  %v1960_v20 = vld [vmem:[%s2669_s10 + $0x318] sm:$0xf0] }
  0x96   : > { %1273 = vmatpush.bf16.msra.mxu0 %v1587_v33  ;;  %v2189_v33 = vld [vmem:[%s2669_s10 + $0x354] sm:$0xf]  ;;  %v2024_v24 = vld [vmem:[%s2669_s10 + $0x398] sm:$0xf0] }
  0x97   : > { %1286 = vmatpush.bf16.msra.mxu1 %v1651_v34  ;;  %v1992_v34 = vld [vmem:[%s2669_s10 + $0x358] sm:$0xf0]  ;;  %v2197_v23 = vld [vmem:[%s2669_s10 + $0x394] sm:$0xf] }
  0x98   : > { %1299 = vmatpush.bf16.msra.mxu2 %v1715_v35  ;;  %v2205_v35 = vld [vmem:[%s2669_s10 + $0x3d4] sm:$0xf]  ;;  %v1995_v38 = vor.u32 %v2189_v33, %v1992_v34  ;;  %v2179_v33 = vld [vmem:[%s2669_s10 + $0x304] sm:$0xf]  ;;  %v1952_v34 = vld [vmem:[%s2669_s10 + $0x308] sm:$0xf0] }
  0x99   : > { %1312 = vmatpush.bf16.msra.mxu3 %v1779_v40  ;;  %v2155_v40 = vld [vmem:[%s2669_s10 + $0x244] sm:$0xf]  ;;  %v2059_v44 = vor.u32 %v2205_v35, %v2056_v36  ;;  %v2016_v36 = vld [vmem:[%s2669_s10 + $0x388] sm:$0xf0] }
  0x9a   : > { %1274 = vmatpush.bf16.msra.mxu0 %v1579_v49  ;;  %v2195_v35 = vld [vmem:[%s2669_s10 + $0x384] sm:$0xf] }
  0x9b   : > { %1287 = vmatpush.bf16.msra.mxu1 %v1643_v52  ;;  %v2153_v52 = vld [vmem:[%s2669_s10 + $0x234] sm:$0xf] }
  0x9c   : > { %1300 = vmatpush.bf16.msra.mxu2 %v1707_v53  ;;  %v1848_v53 = vld [vmem:[%s2669_s10 + $0x238] sm:$0xf0] }
  0x9d   : > { %1313 = vmatpush.bf16.msra.mxu3 %v1771_v57  ;;  %v2185_v57 = vld [vmem:[%s2669_s10 + $0x334] sm:$0xf]  ;;  %v1851_v61 = vor.u32 %v2153_v52, %v1848_v53 }
  0x9e   : > { %1275 = vmatpush.bf16.msra.mxu0 %v1571_v0  ;;  %v1979_v63 = vor.u32 %v2185_v57, %v1976_v58  ;;  %v2151_v0 = vld [vmem:[%s2669_s10 + $0x224] sm:$0xf] }
  0x9f   : > { %1288 = vmatpush.bf16.msra.mxu1 %v1635_v4  ;;  %v1904_v4 = vld [vmem:[%s2669_s10 + $0x2a8] sm:$0xf0] }
  0xa0   : > { %1301 = vmatpush.bf16.msra.mxu2 %v1699_v6  ;;  %v2183_v6 = vld [vmem:[%s2669_s10 + $0x324] sm:$0xf] }
  0xa1   : > { %1314 = vmatpush.bf16.msra.mxu3 %v1763_v10  ;;  %1276 = vmatmul.bf16.vlgmr.msra.gmra.mxu0 %v2785_v21  ;;  %v2187_v21 = vld [vmem:[%s2669_s10 + $0x344] sm:$0xf]  ;;  %v2032_v10 = vld [vmem:[%s2669_s10 + $0x3a8] sm:$0xf0] }
  0xa2   : > { %1320 = vmatpush.bf16.msrb.mxu0 %v1883_v11  ;;  %1289 = vmatmul.bf16.vlgmr.msra.gmra.mxu1 %v2788_v22  ;;  %v2048_v22 = vld [vmem:[%s2669_s10 + $0x3c8] sm:$0xf0]  ;;  %v1987_v51 = vor.u32 %v2187_v21, %v1984_v47  ;;  %v1843_v11 = vor.u32 %v2151_v0, %v1840_v1  ;;  %v492_v47 = vperm.slane %v490_v41, 0 }
  0xa3   : > { %1333 = vmatpush.bf16.msrb.mxu1 %v1947_v12  ;;  %1302 = vmatmul.bf16.vlgmr.msra.gmra.mxu2 %v2772_v5  ;;  %v1931_v5 = vor.u32 %v2173_v30, %v1928_v32  ;;  %v2051_v55 = vor.u32 %v2203_v48, %v2048_v22  ;;  %v1907_v12 = vor.u32 %v2167_v2, %v1904_v4  ;;  %v2163_v30 = vld [vmem:[%s2669_s10 + $0x284] sm:$0xf]  ;;  %v1888_v32 = vld [vmem:[%s2669_s10 + $0x288] sm:$0xf0] }
  0xa4   : > { %1346 = vmatpush.bf16.msrb.mxu2 %v2011_v13  ;;  %1315 = vmatmul.bf16.vlgmr.msra.gmra.mxu3 %v2774_v7  ;;  %v1856_v7 = vld [vmem:[%s2669_s10 + $0x248] sm:$0xf0]  ;;  %v1971_v13 = vor.u32 %v2183_v6, %v1968_v8 }
  0xa5   : > { %1359 = vmatpush.bf16.msrb.mxu3 %v2075_v17  ;;  %v1859_v49 = vor.u32 %v2155_v40, %v1856_v7  ;;  %v2035_v17 = vor.u32 %v2199_v9, %v2032_v10  ;;  %v2019_v40 = vor.u32 %v2195_v35, %v2016_v36 }
  0xa6   : > { %1321 = vmatpush.bf16.msrb.mxu0 %v1875_v25  ;;  %v1835_v25 = vor.u32 %v2149_v14, %v1832_v15 }
  0xa7   : > { %1334 = vmatpush.bf16.msrb.mxu1 %v1939_v26  ;;  %v1899_v26 = vor.u32 %v2165_v16, %v1896_v18 }
  0xa8   : > { %1347 = vmatpush.bf16.msrb.mxu2 %v2003_v27  ;;  %v1963_v27 = vor.u32 %v2181_v19, %v1960_v20 }
  0xa9   : > { %1360 = vmatpush.bf16.msrb.mxu3 %v2067_v31  ;;  %v2027_v31 = vor.u32 %v2197_v23, %v2024_v24 }
  0xaa   : > { %1322 = vmatpush.bf16.msrb.mxu0 %v1867_v37  ;;  %v1827_v37 = vor.u32 %v2147_v28, %v1824_v29 }
  0xab   : > { %1335 = vmatpush.bf16.msrb.mxu1 %v1931_v5  ;;  %v1891_v5 = vor.u32 %v2163_v30, %v1888_v32  ;;  %v1373_v32 = vld [vmem:[#allocation2 + $0x8] sm:$0xff] }
  0xac   : > { %1348 = vmatpush.bf16.msrb.mxu2 %v1995_v38  ;;  %v1955_v38 = vor.u32 %v2179_v33, %v1952_v34 }
  0xad   : > { %1361 = vmatpush.bf16.msrb.mxu3 %v2059_v44 }
  0xae   : > { %1323 = vmatpush.bf16.msrb.mxu0 %v1859_v49 }
  0xaf   : > { %1336 = vmatpush.bf16.msrb.mxu1 %v1923_v50 }
  0xb0   : > { %1349 = vmatpush.bf16.msrb.mxu2 %v1987_v51 }
  0xb1   : > { %1362 = vmatpush.bf16.msrb.mxu3 %v2051_v55 }
  0xb2   : > { %1324 = vmatpush.bf16.msrb.mxu0 %v1851_v61 }
  0xb3   : > { %1337 = vmatpush.bf16.msrb.mxu1 %v1915_v62  ;;  %v1372_v62 = vld [vmem:[#allocation2] sm:$0xff] }
  0xb4   : > { %1350 = vmatpush.bf16.msrb.mxu2 %v1979_v63 }
  0xb5   : > { %1363 = vmatpush.bf16.msrb.mxu3 %v2043_v3 }
  0xb6   : > { %1325 = vmatpush.bf16.msrb.mxu0 %v1843_v11 }
  0xb7   : > { %1338 = vmatpush.bf16.msrb.mxu1 %v1907_v12  ;;  %v493_v12 = vperm.slane %v490_v41, 1 }
  0xb8   : > { %1351 = vmatpush.bf16.msrb.mxu2 %v1971_v13 }
  0xb9   : > { %1364 = vmatpush.bf16.msrb.mxu3 %v2035_v17 }
  0xba   : > { %1326 = vmatpush.bf16.msrb.mxu0 %v1835_v25 }
  0xbb   : > { %1339 = vmatpush.bf16.msrb.mxu1 %v1899_v26 }
  0xbc   : > { %1352 = vmatpush.bf16.msrb.mxu2 %v1963_v27 }
  0xbd   : > { %1365 = vmatpush.bf16.msrb.mxu3 %v2027_v31 }
  0xbe   : > { %1327 = vmatpush.bf16.msrb.mxu0 %v1827_v37 }
  0xbf   : > { %1340 = vmatpush.bf16.msrb.mxu1 %v1891_v5 }
  0xc0   : > { %1353 = vmatpush.bf16.msrb.mxu2 %v1955_v38 }
  0xc1   : > { %1366 = vmatpush.bf16.msrb.mxu3 %v2019_v40  ;;  %1328 = vmatmul.bf16.vlgmr.msrb.gmra.mxu0 %v2842_v42 }
  0xc2   : > { %1341 = vmatmul.bf16.vlgmr.msrb.gmra.mxu1 %v2846_v45 }
  0xc3   : > { %1354 = vmatmul.bf16.vlgmr.msrb.gmra.mxu2 %v2838_v39 }
  0xc4   : > { %1367 = vmatmul.bf16.vlgmr.msrb.gmra.mxu3 %v2844_v43  ;;  %v1374_v43 = vld [vmem:[%s2677_s15] sm:$0x3] }
  0xc5   : > { %v1376_v59 = vperm.slane %v1374_v43, 0  ;;  %v1377_v28 = vperm.slane %v1374_v43, 1 }
  0xde   : > { %v1173_v7 = vpop.f32.mrf.mxu0 }
  0xdf   : > { %v1186_v44 = vpop.f32.mrf.mxu1  ;;  %v1174_v48 = vadd.f32 %v1173_v7, %v492_v47 }
  0xe1   : > { %v1187_v52 = vadd.f32 %v1186_v44, %v1174_v48 }
  0xe6   : > { %v1199_v46 = vpop.f32.mrf.mxu2  ;;  %v1175_v22 = vpop.f32.mrf.mxu0 }
  0xe7   : > { %v1212_v21 = vpop.f32.mrf.mxu3  ;;  %v1188_v49 = vpop.f32.mrf.mxu1  ;;  %v1200_v42 = vadd.f32 %v1199_v46, %v1187_v52 }
  0xe9   : > { %v1213_v53 = vadd.f32 %v1212_v21, %v1200_v42 }
  0xee   : > { %v1201_v50 = vpop.f32.mrf.mxu2 }
  0xef   : > { %v1214_v51 = vpop.f32.mrf.mxu3 }
  0xfe   : > { %v1225_v45 = vpop.f32.mrf.mxu0 }
  0xff   : > { %v1226_v54 = vadd.f32 %v1225_v45, %v1213_v53  ;;  %v1238_v39 = vpop.f32.mrf.mxu1 }
 0x101   : > { %v1239_v55 = vadd.f32 %v1238_v39, %v1226_v54 }
 0x106   : > { %v1251_v56 = vpop.f32.mrf.mxu2  ;;  %v1227_v61 = vpop.f32.mrf.mxu0 }
 0x107   : > { %v1252_v57 = vadd.f32 %v1251_v56, %v1239_v55  ;;  %v1264_v58 = vpop.f32.mrf.mxu3  ;;  %v1240_v63 = vpop.f32.mrf.mxu1 }
 0x109   : > { %v1265_v60 = vadd.f32 %v1264_v58, %v1252_v57 }
 0x10b   : > { %v1380_v0 = vmul.f32 %v1376_v59, %v1265_v60 }
 0x10d   : > { %v1382_v1 = vadd.f32 %v1380_v0, %v1372_v62 }
 0x10e   : > { %v1253_v2 = vpop.f32.mrf.mxu2 }
 0x10f   : > { %1384 = vst [vmem:[#allocation2] sm:$0xff] %v1382_v1  ;;  %v1266_v3 = vpop.f32.mrf.mxu3 }
 0x11e   : > { %v1277_v4 = vpop.f32.mrf.mxu0 }
 0x11f   : > { %v1290_v6 = vpop.f32.mrf.mxu1  ;;  %v1278_v15 = vadd.f32 %v1277_v4, %v493_v12 }
 0x121   : > { %v1291_v16 = vadd.f32 %v1290_v6, %v1278_v15 }
 0x126   : > { %v1303_v8 = vpop.f32.mrf.mxu2  ;;  %v1279_v10 = vpop.f32.mrf.mxu0 }
 0x127   : > { %v1316_v9 = vpop.f32.mrf.mxu3  ;;  %v1292_v11 = vpop.f32.mrf.mxu1  ;;  %v1304_v17 = vadd.f32 %v1303_v8, %v1291_v16 }
 0x129   : > { %v1317_v18 = vadd.f32 %v1316_v9, %v1304_v17 }
 0x12e   : > { %v1305_v13 = vpop.f32.mrf.mxu2 }
 0x12f   : > { %v1318_v14 = vpop.f32.mrf.mxu3 }
 0x13e   : > { %v1329_v19 = vpop.f32.mrf.mxu0 }
 0x13f   : > { %v1342_v20 = vpop.f32.mrf.mxu1  ;;  %v1330_v23 = vadd.f32 %v1329_v19, %v1317_v18 }
 0x141   : > { %v1343_v24 = vadd.f32 %v1342_v20, %v1330_v23 }
 0x146   : > { %v1355_v25 = vpop.f32.mrf.mxu2  ;;  %v1331_v29 = vpop.f32.mrf.mxu0 }
 0x147   : > { %v1356_v26 = vadd.f32 %v1355_v25, %v1343_v24  ;;  %v1368_v27 = vpop.f32.mrf.mxu3  ;;  %v1344_v30 = vpop.f32.mrf.mxu1 }
 0x149   : > { %v1369_v31 = vadd.f32 %v1368_v27, %v1356_v26 }
 0x14b   : > { %v1381_v33 = vmul.f32 %v1377_v28, %v1369_v31  ;;  %1389 = sbr.rel (%p2076_p2) target bundleno = 492 (0x1ec), region = 64 }
 0x14d   : > { %v1383_v34 = vadd.f32 %v1381_v33, %v1373_v32 }
 0x14e   : > { %v1357_v35 = vpop.f32.mrf.mxu2 }
 0x14f   : > { %1385 = vst [vmem:[#allocation2 + $0x8] sm:$0xff] %v1383_v34  ;;  %v1370_v36 = vpop.f32.mrf.mxu3 }
 0x150   : > { %v1390_v37 = vld [vmem:[#allocation2] sm:$0xff]  ;;  %v1396_v40 = vstv %s1395_s27 }
 0x156   : > { %v1391_v5 = vld [vmem:[#allocation2 + $0x8] sm:$0xff] }
 0x157   : > { %v1392_v38 = vadd.f32 %v1391_v5, %v1390_v37 }
 0x159   : > { %1393 = vadd.xlane.f32.xlu0 %v1392_v38 }
 0x1cc   : > { %v1394_v7 = vpop.xlane.xlu0 %1393 }
 0x1cd   : > { %v1397_v41 = vadd.f32 %v1396_v40, %v1394_v7 }
 0x1cf   : > { %v2077_v44 = vmul.f32 -1.442695, %v1397_v41 }
 0x1d1   : > { %2298 = vpow2.f32 %v2077_v44 }
 0x1d7   : > { %v2299_v46 = vpop.eup %2298 }
 0x1d8   : > { %v1401_v21 = vadd.f32 1.0, %v2299_v46 }
 0x1da   : > { %2300 = vrcp.f32 %v1401_v21  ;;  %v1413_v49 = vand.u32 2147483648, %v1401_v21  ;;  %v1411_v51 = vand.u32 2147483647, %v1401_v21  ;;  %vm1407_vm1 = vweird.f32 %v1401_v21 }
 0x1dc   : > { %v1414_v42 = vor.u32 1.1754944e-38, %v1413_v49  ;;  %vm1412_vm3 = vcmp.eq.f32.partialorder %v1411_v51, 8.507059e+37 }
 0x1e0   : > { %v2301_v47 = vpop.eup %2300 }
 0x1e1   : > { %v1403_v48 = vmul.f32 %v2301_v47, %v1401_v21  ;;  %vm1408_vm0 = vweird.f32 %v2301_v47 }
 0x1e2   : > { %vm1409_vm2 = vmor %vm1407_vm1, %vm1408_vm0 }
 0x1e3   : > { %v1404_v22 = vsub.f32 1.0, %v1403_v48 }
 0x1e5   : > { %v1405_v50 = vmul.f32 %v2301_v47, %v1404_v22 }
 0x1e7   : > { %v1406_v52 = vadd.f32 %v2301_v47, %v1405_v50 }
 0x1e9   : > { %v1410_v53 = vsel %vm1409_vm2, %v2301_v47, %v1406_v52 }
 0x1ea   : > { %v1415_v45 = vsel %vm1412_vm3, %v1414_v42, %v1410_v53 }
 0x1eb   : > { %1417 = vst [vmem:[#allocation12] sm:$0xff] %v1415_v45 }
 0x1ec PF: > { %p2242_p3 = scmp.eq.s32.totalorder %s2623_s26, 3  ;;  %s1428_s11 = sshll.u32 %s3002_s5, 4  ;;  %s1429_s11 = int_to_ptr.hbm [resolvable:$true] %s1428_s11 }
 0x1ed   : > { %s2519_s13 = smov [#allocation12]  }
 0x1ee   : > { %s1426_s14 = sshll.u32 %s2519_s13, 4  ;;  %s1427_s14 = int_to_ptr.vmem [resolvable:$true] %s1426_s14 }
 0x1ef   : > { %2222 = dma.vmem_to_hbm [thread:$0]  (%p2242_p3), %s1427_s14, 128, %s1429_s11, [#allocation6]  }
 0x1f0   : > { %2487 = dma.done.wait (%p2242_p3), [#allocation6], 128  }
 0x1f1   : > { %2489 = vsyncadd (%p2242_p3), [#allocation6], 4294967168 }
 0x1f2 PF: > { %s24_s25 = sadd.s32 1, %s2512_s25   ;;  %s3013_s26 = sld [smem:[#allocation17_spill]] }
 0x1f3   : > { %p21_p4 = scmp.ge.s32.totalorder %s24_s25, 6   ;;  %s3014_s20 = smov %s2496_s21 }
 0x1f4   : > { %s3015_s21 = smov %s2500_s22  ;;  %s3016_s22 = smov %s2603_s7 }
 0x1f5   : > { %s3017_s23 = smov %s2508_s24  ;;  %23 = sbr.rel (!%p21_p4) target bundleno = 12 (0xc), region = 116 }
 0x1f8   : > { %s3018_s24 = smov %s3013_s26 }
 0x1fa   :  { %1442 = vsyncpa [#allocation5], 1 }
 0x1fb   :  { %1444 = vsyncpa [#allocation5 + $0x1], 1 }
 0x1fc   :  { %1445 = vsyncpa [#allocation8], 1 }
 0x1fd   :  { %1447 = vsyncpa [#allocation8 + $0x1], 1 }
 0x1fe   :  { %1448 = vsyncpa [#allocation11], 1 }
 0x1ff   :  { %1450 = vsyncpa [#allocation11 + $0x1], 1 }
 0x200   :  { %1451 = vsyncpa [#allocation6], 1 }
 0x201   :  { %1453 = vsyncpa [#allocation6 + $0x1], 1 }

</bundles_post_ra>
